<compile_context>
chip_gen: v5e
topology: v5e:2x2
jax: 0.10.0
libtpu: 0.0.40
codegen_flags: <defaults>
</compile_context>

<pallas_src>
import jax
import jax.numpy as jnp
from jax.experimental import pallas as pl
from jax.experimental.pallas import tpu as pltpu

LANES = 128
SUBLANES = 8

# ~2 MiB blocks: measured tiled-copy sweet spot (~85% of HBM roofline) and,
# with default double-buffering (2 in + 2 out buffers), only ~8 MiB of VMEM —
# safe on v5e/v6e (128 MiB physical) and v7x (64 MiB physical).
_TARGET_BLOCK_BYTES = 2 * 1024 * 1024
_MAX_LANE_WIDTH = 32768                 # lane-dense slab width cap
_VMEM_LIMIT_BYTES = 32 * 1024 * 1024    # raise v5e's 16 MiB default; fits all gens


def _copy_kernel(x_ref, o_ref):
    # Identity copy of the current (block_rows, lane) slab.
    o_ref[...] = x_ref[...]


def _choose_layout(total, itemsize):
    """Pick (rows, lane, block_rows) with rows * lane == total (no padding).

    Lane width preference: largest multiple-of-128 divisor of `total`
    (unmasked lane-dense stores), capped at _MAX_LANE_WIDTH; otherwise the
    largest divisor <= cap (the block still spans the full last dim, so the
    (8,128) BlockSpec constraint is satisfied either way).
    """
    lane = None
    for k in range(min(_MAX_LANE_WIDTH, total) // LANES, 0, -1):
        if total % (LANES * k) == 0:
            lane = LANES * k
            break
    if lane is None:
        for d in range(min(_MAX_LANE_WIDTH, total), 0, -1):
            if total % d == 0:
                lane = d
                break

    rows = total // lane

    # Block row count: aim for ~_TARGET_BLOCK_BYTES per block.
    target_elems = max(_TARGET_BLOCK_BYTES // itemsize, SUBLANES * lane)
    block_rows = max(target_elems // lane, 1)
    if rows < SUBLANES:
        block_rows = rows                       # block == full dim -> allowed
    else:
        block_rows = max((min(block_rows, rows) // SUBLANES) * SUBLANES,
                         SUBLANES)              # multiple of 8 -> allowed
    return rows, lane, block_rows


def pixel_shuffle_sc(x, scale):
    """Pallas implementation of PixelShuffleSC.forward.

    x: (N, C, D, H, W) array. Returns (N, C*scale^2, D, H//scale, W//scale).
    """
    N, C, D, H, W = x.shape
    if H % scale != 0 or W % scale != 0:
        raise ValueError(
            f"PixelShuffleSC: H ({H}) and W ({W}) must be divisible by "
            f"scale ({scale}).")
    out_C = C * scale ** 2
    out_H = H // scale
    out_W = W // scale

    total = N * C * D * H * W
    itemsize = jnp.dtype(x.dtype).itemsize
    rows, lane, block_rows = _choose_layout(total, itemsize)

    # Metadata-only reshape to a lane-dense 2D slab (row-major order preserved,
    # identical to torch's contiguous layout). No jnp.pad / extra HBM pass.
    x2d = x.reshape(rows, lane)

    grid = (pl.cdiv(rows, block_rows),)

    out2d = pl.pallas_call(
        _copy_kernel,
        out_shape=jax.ShapeDtypeStruct((rows, lane), x.dtype),
        grid_spec=pltpu.PrefetchScalarGridSpec(
            num_scalar_prefetch=0,
            grid=grid,
            in_specs=[pl.BlockSpec((block_rows, lane), lambda i: (i, 0))],
            out_specs=pl.BlockSpec((block_rows, lane), lambda i: (i, 0)),
        ),
        compiler_params=pltpu.CompilerParams(
            dimension_semantics=("parallel",),
            vmem_limit_bytes=_VMEM_LIMIT_BYTES,
        ),
    )(x2d)

    # Metadata-only reshape to the module's output shape.
    return out2d.reshape(N, out_C, D, out_H, out_W)


if __name__ == "__main__":
    key = jax.random.PRNGKey(0)
    scale = 2
    # Small shapes consistent with the module: (N, C, D, H, W)
    N, C, D, H, W = 2, 4, 3, 16, 16
    x = jax.random.normal(key, (N, C, D, H, W), dtype=jnp.float32)

    y = pixel_shuffle_sc(x, scale)
    y = jax.block_until_ready(y)

    # Reference: same row-major reshape semantics as torch.reshape.
    y_ref = x.reshape(N, C * scale ** 2, D, H // scale, W // scale)

    assert y.shape == (N, C * scale ** 2, D, H // scale, W // scale), y.shape
    assert y.dtype == x.dtype
    assert jnp.array_equal(y, y_ref), "mismatch vs reference reshape"

    print("KERNEL_OK")
</pallas_src>

<mosaic_0001>
module attributes {stable_mosaic.version = 11 : i64} {
  func.func @_copy_kernel(%arg0: i32, %arg1: memref<1x6144xf32, #tpu.memory_space<vmem>>, %arg2: memref<1x6144xf32, #tpu.memory_space<vmem>>) attributes {dimension_semantics = [#tpu.dimension_semantics<parallel>], iteration_bounds = array<i64: 1>, scalar_prefetch = 0 : i64, scratch_operands = 0 : i64, tpu.core_type = #tpu.core_type<tc>, window_params = [{transform_indices = @transform_0, window_bounds = array<i64: 1, 6144>}, {transform_indices = @transform_1, window_bounds = array<i64: 1, 6144>}]} {
    %c0 = arith.constant 0 : index
    %c0_0 = arith.constant 0 : index
    %0 = vector.load %arg1[%c0, %c0_0] : memref<1x6144xf32, #tpu.memory_space<vmem>>, vector<1x6144xf32>
    %c0_1 = arith.constant 0 : index
    %c0_2 = arith.constant 0 : index
    %1 = vector.load %arg2[%c0_1, %c0_2] : memref<1x6144xf32, #tpu.memory_space<vmem>>, vector<1x6144xf32>
    tpu.vector_store %arg2[%c0_1, %c0_2], %0 {strides = array<i32>} : memref<1x6144xf32, #tpu.memory_space<vmem>>, vector<1x6144xf32>,
    return
  }
  func.func @transform_0(%arg0: i32) -> (i32, i32) {
    %c0_i32 = arith.constant 0 : i32
    %c0_i32_0 = arith.constant 0 : i32
    return %arg0, %c0_i32 : i32, i32
  }
  func.func @transform_1(%arg0: i32) -> (i32, i32) {
    %c0_i32 = arith.constant 0 : i32
    %c0_i32_0 = arith.constant 0 : i32
    return %arg0, %c0_i32 : i32, i32
  }
}

</mosaic_0001>

<bundles_post_ra>
// kernel: tpu_custom_call.1
= control target key start
LH: loop header
LB: loop body
LE: loop exit
PB: predicated region body
PF: predicated region fallthrough
CT: control target
= control target key end

     0   :  { %6 = vsyncpa [#allocation3], 0  ;;  %s124_s0 = inlined_call_operand.hbm [shape: f32[1,6144], index: 0, kind: input, shape index: {}]   ;;  %s125_s1 = inlined_call_operand.hbm [shape: f32[1,6144], index: 1, kind: output, shape index: {}]  }
   0x1   :  { %7 = vsyncpa [#allocation4], 0  ;;  %s13_s8 = sshll.u32 %s124_s0, 4  ;;  %s106_s9 = smov [#allocation2]   ;;  %s14_s8 = int_to_ptr.hbm [resolvable:$true] %s13_s8 }
   0x2   :  { %s15_s10 = sshll.u32 %s106_s9, 4  ;;  %s16_s10 = int_to_ptr.vmem [resolvable:$true] %s15_s10 }
   0x3   :  { %18 = dma.hbm_to_vmem [thread:$0]  %s14_s8, 768, %s16_s10, [#allocation3]  }
   0x4   :  { %102 = dma.done.wait [#allocation3], 768  }
   0x5   :  { %103 = vsyncadd [#allocation3], 4294966528  ;;  %v23_v0 = vld [vmem:[#allocation2] sm:$0xff]  ;;  %v24_v1 = vld [vmem:[#allocation2 + $0x8] sm:$0xff]  ;;  %s107_s11 = smov [#allocation5]   ;;  %s42_s15 = sshll.u32 %s125_s1, 4  ;;  %s43_s15 = int_to_ptr.hbm [resolvable:$true] %s42_s15 }
   0x6   :  { %v25_v2 = vld [vmem:[#allocation2 + $0x10] sm:$0xff]  ;;  %29 = vst [vmem:[#allocation5] sm:$0xff] %v23_v0  ;;  %v26_v3 = vld [vmem:[#allocation2 + $0x18] sm:$0xff]  ;;  %s40_s12 = sshll.u32 %s107_s11, 4  ;;  %v27_v4 = vld [vmem:[#allocation2 + $0x20] sm:$0xff]  ;;  %s41_s12 = int_to_ptr.vmem [resolvable:$true] %s40_s12 }
   0x7   :  { %30 = vst [vmem:[#allocation5 + $0x8] sm:$0xff] %v24_v1  ;;  %v28_v5 = vld [vmem:[#allocation2 + $0x28] sm:$0xff] }
   0x8   :  { %31 = vst [vmem:[#allocation5 + $0x10] sm:$0xff] %v25_v2 }
   0x9   :  { %32 = vst [vmem:[#allocation5 + $0x18] sm:$0xff] %v26_v3 }
   0xa   :  { %33 = vst [vmem:[#allocation5 + $0x20] sm:$0xff] %v27_v4 }
   0xb   :  { %34 = vst [vmem:[#allocation5 + $0x28] sm:$0xff] %v28_v5 }
   0xc   :  { %45 = dma.vmem_to_hbm [thread:$0]  %s41_s12, 768, %s43_s15, [#allocation4]  }
   0xd   :  { %104 = dma.done.wait [#allocation4], 768  }
   0xe   :  { %105 = vsyncadd [#allocation4], 4294966528 }
   0xf   :  { %50 = vsyncpa [#allocation3], 1 }
  0x10   :  { %51 = vsyncpa [#allocation4], 1 }

</bundles_post_ra>
